<compile_context>
chip_gen: v6e
topology: v6e:2x2x1
jax: 0.10.0
libtpu: 0.0.40
codegen_flags: <defaults>
</compile_context>

<pallas_src>
import functools

import jax
import jax.numpy as jnp
from jax.experimental import pallas as pl
from jax.experimental.pallas import tpu as pltpu

LANES = 128  # lane width; q-head output is padded to this many columns


# ----------------------------------------------------------------------------
# Pallas kernel: whole forward pass fused (3 matmuls + bias + ReLU hot path).
# ----------------------------------------------------------------------------
def _critic_kernel(s_ref, a_ref, w1s_ref, w1a_ref, b1_ref,
                   w2_ref, b2_ref, wq_ref, bq_ref, o_ref):
    # fc1 + ReLU, with the state/action concat fused as two partial matmuls.
    h1 = jnp.dot(s_ref[...], w1s_ref[...], preferred_element_type=jnp.float32)
    h1 = h1 + jnp.dot(a_ref[...], w1a_ref[...],
                      preferred_element_type=jnp.float32)
    h1 = jnp.maximum(h1 + b1_ref[...], 0.0)
    # fc2 + ReLU (cast back to the compute dtype so bf16 weights stay on the
    # fast MXU path; accumulation remains f32).
    h2 = jnp.dot(h1.astype(w2_ref.dtype), w2_ref[...],
                 preferred_element_type=jnp.float32)
    h2 = jnp.maximum(h2 + b2_ref[...], 0.0)
    # q head: lane-dense (H2, 128) padded weight, real q lives in column 0.
    q = jnp.dot(h2.astype(wq_ref.dtype), wq_ref[...],
                preferred_element_type=jnp.float32)
    o_ref[...] = q + bq_ref[...]


def critic_forward(state, action, params, *, compute_dtype=jnp.float32,
                   block_b=512):
    """state: (B, obs_dim), action: (B, act_dim) -> q_value: (B, 1) float32."""
    w1, b1, w2, b2, wq, bq = params
    B, obs_dim = state.shape
    act_dim = action.shape[-1]
    H1 = w1.shape[1]
    H2 = w2.shape[1]
    cdt = jnp.dtype(compute_dtype)

    # --- tiny parameter prep (all O(H*128), negligible HBM traffic) ---------
    # Split fc1 weight so the concat is fused inside the kernel.
    w1s = w1[:obs_dim].astype(cdt)
    w1a = w1[obs_dim:].astype(cdt)
    w2c = w2.astype(cdt)
    # Lane-dense q head: pad the single output column out to 128 lanes.
    wq_pad = jnp.zeros((H2, LANES), cdt).at[:, 0].set(wq[:, 0].astype(cdt))
    bq_pad = jnp.zeros((1, LANES), jnp.float32).at[0, 0].set(
        bq.reshape(()).astype(jnp.float32))
    b1_row = b1.reshape(1, H1).astype(jnp.float32)
    b2_row = b2.reshape(1, H2).astype(jnp.float32)
    s = state.astype(cdt)
    a = action.astype(cdt)

    # --- batch tiling --------------------------------------------------------
    # If the whole batch fits in one tile, use it (full-dim block is always
    # layout-legal); otherwise stream 512-row tiles (multiple of 8/16 sublanes)
    # so input/output DMAs double-buffer behind the MXU work.
    tb = B if B <= block_b else block_b
    grid = (pl.cdiv(B, tb),)

    batch_spec = lambda d: pl.BlockSpec((tb, d), lambda i: (i, 0))
    fixed = lambda shape: pl.BlockSpec(shape, lambda i: (0, 0))  # resident

    itemsize = cdt.itemsize
    flops = 2 * B * (obs_dim * H1 + act_dim * H1 + H1 * H2 + H2 * LANES)
    bytes_accessed = (
        B * (obs_dim + act_dim) * itemsize          # inputs
        + B * LANES * 4                             # lane-dense output slab
        + (w1.size + w2.size + H2 * LANES) * itemsize  # weights
        + (H1 + H2 + LANES) * 4                     # biases
    )

    out = pl.pallas_call(
        _critic_kernel,
        out_shape=jax.ShapeDtypeStruct((B, LANES), jnp.float32),
        grid=grid,
        in_specs=[
            batch_spec(obs_dim),        # state tile
            batch_spec(act_dim),        # action tile
            fixed((obs_dim, H1)),       # w1 (state part)
            fixed((act_dim, H1)),       # w1 (action part)
            fixed((1, H1)),             # b1
            fixed((H1, H2)),            # w2
            fixed((1, H2)),             # b2
            fixed((H2, LANES)),         # wq (lane-dense padded)
            fixed((1, LANES)),          # bq (lane-dense padded)
        ],
        out_specs=pl.BlockSpec((tb, LANES), lambda i: (i, 0)),
        compiler_params=pltpu.CompilerParams(
            dimension_semantics=("parallel",)),     # megacore-shard the batch
        cost_estimate=pl.CostEstimate(
            flops=int(flops), transcendentals=0,
            bytes_accessed=int(bytes_accessed)),
    )(s, a, w1s, w1a, b1_row, w2c, b2_row, wq_pad, bq_pad)

    return out[:, :1]


# ----------------------------------------------------------------------------
# Deterministic parameter init (Xavier-uniform weights, zero biases),
# matching the shapes implied by the module's __init__ with hidden_dim=(H1,H2).
# ----------------------------------------------------------------------------
def xavier_uniform(key, fan_in, fan_out, dtype=jnp.float32):
    limit = (6.0 / (fan_in + fan_out)) ** 0.5
    # stored as (in, out): same fan_in/fan_out as PyTorch's (out, in) weight
    return jax.random.uniform(key, (fan_in, fan_out), dtype, -limit, limit)


def init_critic_params(key, obs_dim, act_dim, hidden_dim=(128, 128)):
    # TODO(synk): optional fc3 branch (len(hidden_dim) == 3) not wired in.
    assert len(hidden_dim) == 2
    d_in = obs_dim + act_dim
    k1, k2, k3 = jax.random.split(key, 3)
    w1 = xavier_uniform(k1, d_in, hidden_dim[0])
    b1 = jnp.zeros((hidden_dim[0],), jnp.float32)
    w2 = xavier_uniform(k2, hidden_dim[0], hidden_dim[1])
    b2 = jnp.zeros((hidden_dim[1],), jnp.float32)
    wq = xavier_uniform(k3, hidden_dim[1], 1)
    bq = jnp.zeros((1,), jnp.float32)
    return (w1, b1, w2, b2, wq, bq)


def critic_reference(state, action, params):
    """Pure-JAX reference mirroring the PyTorch forward."""
    w1, b1, w2, b2, wq, bq = params
    x = jnp.concatenate([state, action], axis=-1)
    x = jax.nn.relu(x @ w1 + b1)
    x = jax.nn.relu(x @ w2 + b2)
    return x @ wq + bq


if __name__ == "__main__":
    key = jax.random.PRNGKey(0)
    k_params, k_state, k_action = jax.random.split(key, 3)

    batch, obs_dim, act_dim = 8, 8, 4
    hidden_dim = (128, 128)

    params = init_critic_params(k_params, obs_dim, act_dim, hidden_dim)
    state = jax.random.normal(k_state, (batch, obs_dim), jnp.float32)
    action = jax.random.normal(k_action, (batch, act_dim), jnp.float32)

    q_ref = critic_reference(state, action, params)

    # f32 compute path (tight check).
    fwd_f32 = jax.jit(functools.partial(critic_forward,
                                        compute_dtype=jnp.float32))
    q = jax.block_until_ready(fwd_f32(state, action, params))
    assert q.shape == (batch, 1)
    assert jnp.allclose(q, q_ref, atol=1e-5, rtol=1e-5), (q, q_ref)

    # bf16 compute path for v6e/v7x (f32 accumulation; loose check).
    fwd_bf16 = jax.jit(functools.partial(critic_forward,
                                         compute_dtype=jnp.bfloat16))
    q_bf16 = jax.block_until_ready(fwd_bf16(state, action, params))
    assert q_bf16.shape == (batch, 1)
    assert jnp.allclose(q_bf16, q_ref, atol=1e-1, rtol=1e-1), (q_bf16, q_ref)

    print("KERNEL_OK")
</pallas_src>

<mosaic_0001>
module attributes {stable_mosaic.version = 11 : i64} {
  func.func @_critic_kernel(%arg0: i32, %arg1: memref<8x8xf32, #tpu.memory_space<vmem>>, %arg2: memref<8x4xf32, #tpu.memory_space<vmem>>, %arg3: memref<8x128xf32, #tpu.memory_space<vmem>>, %arg4: memref<4x128xf32, #tpu.memory_space<vmem>>, %arg5: memref<1x128xf32, #tpu.memory_space<vmem>>, %arg6: memref<128x128xf32, #tpu.memory_space<vmem>>, %arg7: memref<1x128xf32, #tpu.memory_space<vmem>>, %arg8: memref<128x128xf32, #tpu.memory_space<vmem>>, %arg9: memref<1x128xf32, #tpu.memory_space<vmem>>, %arg10: memref<8x128xf32, #tpu.memory_space<vmem>>) attributes {dimension_semantics = [#tpu.dimension_semantics<parallel>], iteration_bounds = array<i64: 1>, scalar_prefetch = 0 : i64, scratch_operands = 0 : i64, tpu.core_type = #tpu.core_type<tc>, window_params = [{transform_indices = @transform_0, window_bounds = array<i64: 8, 8>}, {transform_indices = @transform_1, window_bounds = array<i64: 8, 4>}, {pipeline_mode = #tpu.pipeline_mode<synchronous>, transform_indices = @transform_2, window_bounds = array<i64: 8, 128>}, {pipeline_mode = #tpu.pipeline_mode<synchronous>, transform_indices = @transform_3, window_bounds = array<i64: 4, 128>}, {pipeline_mode = #tpu.pipeline_mode<synchronous>, transform_indices = @transform_4, window_bounds = array<i64: 1, 128>}, {pipeline_mode = #tpu.pipeline_mode<synchronous>, transform_indices = @transform_5, window_bounds = array<i64: 128, 128>}, {pipeline_mode = #tpu.pipeline_mode<synchronous>, transform_indices = @transform_6, window_bounds = array<i64: 1, 128>}, {pipeline_mode = #tpu.pipeline_mode<synchronous>, transform_indices = @transform_7, window_bounds = array<i64: 128, 128>}, {pipeline_mode = #tpu.pipeline_mode<synchronous>, transform_indices = @transform_8, window_bounds = array<i64: 1, 128>}, {transform_indices = @transform_9, window_bounds = array<i64: 8, 128>}]} {
    %c0 = arith.constant 0 : index
    %c0_0 = arith.constant 0 : index
    %0 = vector.load %arg1[%c0, %c0_0] : memref<8x8xf32, #tpu.memory_space<vmem>>, vector<8x8xf32>
    %c0_1 = arith.constant 0 : index
    %c0_2 = arith.constant 0 : index
    %1 = vector.load %arg3[%c0_1, %c0_2] : memref<8x128xf32, #tpu.memory_space<vmem>>, vector<8x128xf32>
    %cst = arith.constant dense<0.000000e+00> : vector<8x128xf32>
    %2 = tpu.matmul %0, %1, %cst {dimension_numbers = #tpu.dot_dimension_numbers<[1], [0], [0], [1], [0, 0, 1, 1], [], []>} : vector<8x8xf32>, vector<8x128xf32>, vector<8x128xf32> -> vector<8x128xf32>
    %c0_3 = arith.constant 0 : index
    %c0_4 = arith.constant 0 : index
    %3 = vector.load %arg2[%c0_3, %c0_4] : memref<8x4xf32, #tpu.memory_space<vmem>>, vector<8x4xf32>
    %c0_5 = arith.constant 0 : index
    %c0_6 = arith.constant 0 : index
    %4 = vector.load %arg4[%c0_5, %c0_6] : memref<4x128xf32, #tpu.memory_space<vmem>>, vector<4x128xf32>
    %cst_7 = arith.constant dense<0.000000e+00> : vector<8x128xf32>
    %5 = tpu.matmul %3, %4, %cst_7 {dimension_numbers = #tpu.dot_dimension_numbers<[1], [0], [0], [1], [0, 0, 1, 1], [], []>} : vector<8x4xf32>, vector<4x128xf32>, vector<8x128xf32> -> vector<8x128xf32>
    %6 = arith.addf %2, %5 : vector<8x128xf32>
    %c0_8 = arith.constant 0 : index
    %c0_9 = arith.constant 0 : index
    %7 = vector.load %arg5[%c0_8, %c0_9] : memref<1x128xf32, #tpu.memory_space<vmem>>, vector<1x128xf32>
    %8 = vector.broadcast %7 : vector<1x128xf32> to vector<8x128xf32>
    %9 = arith.addf %6, %8 : vector<8x128xf32>
    %cst_10 = arith.constant 0.000000e+00 : f32
    %10 = vector.broadcast %cst_10 : f32 to vector<8x128xf32>
    %11 = arith.maximumf %9, %10 : vector<8x128xf32>
    %c0_11 = arith.constant 0 : index
    %c0_12 = arith.constant 0 : index
    %12 = vector.load %arg6[%c0_11, %c0_12] : memref<128x128xf32, #tpu.memory_space<vmem>>, vector<128x128xf32>
    %cst_13 = arith.constant dense<0.000000e+00> : vector<8x128xf32>
    %13 = tpu.matmul %11, %12, %cst_13 {dimension_numbers = #tpu.dot_dimension_numbers<[1], [0], [0], [1], [0, 0, 1, 1], [], []>} : vector<8x128xf32>, vector<128x128xf32>, vector<8x128xf32> -> vector<8x128xf32>
    %c0_14 = arith.constant 0 : index
    %c0_15 = arith.constant 0 : index
    %14 = vector.load %arg7[%c0_14, %c0_15] : memref<1x128xf32, #tpu.memory_space<vmem>>, vector<1x128xf32>
    %15 = vector.broadcast %14 : vector<1x128xf32> to vector<8x128xf32>
    %16 = arith.addf %13, %15 : vector<8x128xf32>
    %cst_16 = arith.constant 0.000000e+00 : f32
    %17 = vector.broadcast %cst_16 : f32 to vector<8x128xf32>
    %18 = arith.maximumf %16, %17 : vector<8x128xf32>
    %c0_17 = arith.constant 0 : index
    %c0_18 = arith.constant 0 : index
    %19 = vector.load %arg8[%c0_17, %c0_18] : memref<128x128xf32, #tpu.memory_space<vmem>>, vector<128x128xf32>
    %cst_19 = arith.constant dense<0.000000e+00> : vector<8x128xf32>
    %20 = tpu.matmul %18, %19, %cst_19 {dimension_numbers = #tpu.dot_dimension_numbers<[1], [0], [0], [1], [0, 0, 1, 1], [], []>} : vector<8x128xf32>, vector<128x128xf32>, vector<8x128xf32> -> vector<8x128xf32>
    %c0_20 = arith.constant 0 : index
    %c0_21 = arith.constant 0 : index
    %21 = vector.load %arg9[%c0_20, %c0_21] : memref<1x128xf32, #tpu.memory_space<vmem>>, vector<1x128xf32>
    %22 = vector.broadcast %21 : vector<1x128xf32> to vector<8x128xf32>
    %23 = arith.addf %20, %22 : vector<8x128xf32>
    %c0_22 = arith.constant 0 : index
    %c0_23 = arith.constant 0 : index
    %24 = vector.load %arg10[%c0_22, %c0_23] : memref<8x128xf32, #tpu.memory_space<vmem>>, vector<8x128xf32>
    tpu.vector_store %arg10[%c0_22, %c0_23], %23 {strides = array<i32>} : memref<8x128xf32, #tpu.memory_space<vmem>>, vector<8x128xf32>,
    return
  }
  func.func @transform_0(%arg0: i32) -> (i32, i32) {
    %c0_i32 = arith.constant 0 : i32
    %c0_i32_0 = arith.constant 0 : i32
    return %arg0, %c0_i32 : i32, i32
  }
  func.func @transform_1(%arg0: i32) -> (i32, i32) {
    %c0_i32 = arith.constant 0 : i32
    %c0_i32_0 = arith.constant 0 : i32
    return %arg0, %c0_i32 : i32, i32
  }
  func.func @transform_2(%arg0: i32) -> (i32, i32) {
    %c0_i32 = arith.constant 0 : i32
    %c0_i32_0 = arith.constant 0 : i32
    %c0_i32_1 = arith.constant 0 : i32
    return %c0_i32, %c0_i32_0 : i32, i32
  }
  func.func @transform_3(%arg0: i32) -> (i32, i32) {
    %c0_i32 = arith.constant 0 : i32
    %c0_i32_0 = arith.constant 0 : i32
    %c0_i32_1 = arith.constant 0 : i32
    return %c0_i32, %c0_i32_0 : i32, i32
  }
  func.func @transform_4(%arg0: i32) -> (i32, i32) {
    %c0_i32 = arith.constant 0 : i32
    %c0_i32_0 = arith.constant 0 : i32
    %c0_i32_1 = arith.constant 0 : i32
    return %c0_i32, %c0_i32_0 : i32, i32
  }
  func.func @transform_5(%arg0: i32) -> (i32, i32) {
    %c0_i32 = arith.constant 0 : i32
    %c0_i32_0 = arith.constant 0 : i32
    %c0_i32_1 = arith.constant 0 : i32
    return %c0_i32, %c0_i32_0 : i32, i32
  }
  func.func @transform_6(%arg0: i32) -> (i32, i32) {
    %c0_i32 = arith.constant 0 : i32
    %c0_i32_0 = arith.constant 0 : i32
    %c0_i32_1 = arith.constant 0 : i32
    return %c0_i32, %c0_i32_0 : i32, i32
  }
  func.func @transform_7(%arg0: i32) -> (i32, i32) {
    %c0_i32 = arith.constant 0 : i32
    %c0_i32_0 = arith.constant 0 : i32
    %c0_i32_1 = arith.constant 0 : i32
    return %c0_i32, %c0_i32_0 : i32, i32
  }
  func.func @transform_8(%arg0: i32) -> (i32, i32) {
    %c0_i32 = arith.constant 0 : i32
    %c0_i32_0 = arith.constant 0 : i32
    %c0_i32_1 = arith.constant 0 : i32
    return %c0_i32, %c0_i32_0 : i32, i32
  }
  func.func @transform_9(%arg0: i32) -> (i32, i32) {
    %c0_i32 = arith.constant 0 : i32
    %c0_i32_0 = arith.constant 0 : i32
    return %arg0, %c0_i32 : i32, i32
  }
}

</mosaic_0001>

<bundles_post_ra>
// kernel: critic_forward.1
= control target key start
LH: loop header
LB: loop body
LE: loop exit
PB: predicated region body
PF: predicated region fallthrough
CT: control target
= control target key end

     0   :  { %vm40_vm0 = vcmask 1043456   ;;  %v515_v0 = vmov 0.0   ;;  %vm36_vm1 = vcmask 31744   ;;  %vm114_vm2 = vcmask 64512   ;;  %s725_s3 = inlined_call_operand.vmem [shape: f32[4,128], index: 3, kind: input, shape index: {}]   ;;  %s726_s2 = inlined_call_operand.vmem [shape: f32[8,128], index: 2, kind: input, shape index: {}]   ;;  %s727_s1 = inlined_call_operand.vmem [shape: f32[8,4], index: 1, kind: input, shape index: {}]   ;;  %s728_s0 = inlined_call_operand.vmem [shape: f32[8,8], index: 0, kind: input, shape index: {}]   ;;  %s729_s5 = inlined_call_operand.vmem [shape: f32[128,128], index: 5, kind: input, shape index: {}]   ;;  %s730_s7 = inlined_call_operand.vmem [shape: f32[128,128], index: 7, kind: input, shape index: {}]   ;;  %s731_s4 = inlined_call_operand.vmem [shape: f32[1,128], index: 4, kind: input, shape index: {}]   ;;  %s732_s6 = inlined_call_operand.vmem [shape: f32[1,128], index: 6, kind: input, shape index: {}]   ;;  %s733_s8 = inlined_call_operand.vmem [shape: f32[1,128], index: 8, kind: input, shape index: {}]   ;;  %s734_s9 = inlined_call_operand.vmem [shape: f32[8,128], index: 9, kind: output, shape index: {}]  }
   0x1   :  { %433 = vmatprep.subr.mxu0 %v515_v0  ;;  %438 = vmatprep.subr.mxu1 %v515_v0  ;;  %v35_v1 = vld [vmem:[%s725_s3] sm:$0xf]  ;;  %vm516_vm3 = vmmov 0   ;;  %v212_v5 = vld [vmem:[%s729_s5 + $0x78] sm:$0xff]  ;;  %v211_v6 = vld [vmem:[%s729_s5 + $0x70] sm:$0xff] }
   0x2   :  { %v33_v2 = vld [vmem:[%s726_s2] sm:$0xff]  ;;  %434 = vmatpush3.msk.msra.mxu0 %vm40_vm0, %v35_v1  ;;  %435 = vmatprep.mubr.msk.f32.mxu0 %vm516_vm3, %v515_v0  ;;  %v210_v7 = vld [vmem:[%s729_s5 + $0x68] sm:$0xff]  ;;  %v208_v9 = vld [vmem:[%s729_s5 + $0x58] sm:$0xff] }
   0x3   :  { %v34_v3 = vld [vmem:[%s727_s1] sm:$0xff]  ;;  %439 = vmatpush3.msra.mxu1 %v33_v2  ;;  %440 = vmatprep.mubr.msk.f32.mxu1 %vm516_vm3, %v515_v0  ;;  %v207_v10 = vld [vmem:[%s729_s5 + $0x50] sm:$0xff]  ;;  %v206_v11 = vld [vmem:[%s729_s5 + $0x48] sm:$0xff] }
   0x4   :  { %v32_v4 = vld [vmem:[%s728_s0] sm:$0xff]  ;;  %436 = vmatmul.mubr.msk.f32.vlgmr.msra.gmra.mxu0 %vm36_vm1, %v34_v3  ;;  %443 = vmatprep.subr.mxu0 %v515_v0  ;;  %v204_v13 = vld [vmem:[%s729_s5 + $0x38] sm:$0xff]  ;;  %v203_v14 = vld [vmem:[%s729_s5 + $0x30] sm:$0xff] }
   0x5   :  { %441 = vmatmul.mubr.msk.f32.vlgmr.msra.gmra.mxu1 %vm114_vm2, %v32_v4  ;;  %475 = vmatprep.mubr.msk.f32.mxu0 %vm516_vm3, %v515_v0  ;;  %v209_v8 = vld [vmem:[%s729_s5 + $0x60] sm:$0xff]  ;;  %v202_v15 = vld [vmem:[%s729_s5 + $0x28] sm:$0xff]  ;;  %v200_v17 = vld [vmem:[%s729_s5 + $0x18] sm:$0xff] }
   0x6   :  { %444 = vmatpush3.msra.mxu0 %v212_v5  ;;  %478 = vmatprep.subr.mxu1 %v515_v0  ;;  %v205_v12 = vld [vmem:[%s729_s5 + $0x40] sm:$0xff]  ;;  %v199_v18 = vld [vmem:[%s729_s5 + $0x10] sm:$0xff]  ;;  %v198_v19 = vld [vmem:[%s729_s5 + $0x8] sm:$0xff] }
   0x7   :  { %445 = vmatprep.subr.mxu0 %v515_v0  ;;  %510 = vmatprep.mubr.msk.f32.mxu1 %vm516_vm3, %v515_v0  ;;  %v201_v16 = vld [vmem:[%s729_s5 + $0x20] sm:$0xff]  ;;  %v306_v21 = vld [vmem:[%s730_s7 + $0x78] sm:$0xff]  ;;  %v305_v22 = vld [vmem:[%s730_s7 + $0x70] sm:$0xff] }
   0x8   :  { %446 = vmatpush3.msra.mxu0 %v211_v6  ;;  %v197_v20 = vld [vmem:[%s729_s5] sm:$0xff]  ;;  %479 = vmatpush3.msra.mxu1 %v306_v21  ;;  %v304_v23 = vld [vmem:[%s730_s7 + $0x68] sm:$0xff]  ;;  %v302_v25 = vld [vmem:[%s730_s7 + $0x58] sm:$0xff] }
   0x9   :  { %447 = vmatprep.subr.mxu0 %v515_v0  ;;  %480 = vmatprep.subr.mxu1 %v515_v0  ;;  %v303_v24 = vld [vmem:[%s730_s7 + $0x60] sm:$0xff]  ;;  %v301_v26 = vld [vmem:[%s730_s7 + $0x50] sm:$0xff]  ;;  %v300_v27 = vld [vmem:[%s730_s7 + $0x48] sm:$0xff] }
   0xa   :  { %448 = vmatpush3.msra.mxu0 %v210_v7  ;;  %481 = vmatpush3.msra.mxu1 %v305_v22  ;;  %v299_v28 = vld [vmem:[%s730_s7 + $0x40] sm:$0xff]  ;;  %v298_v29 = vld [vmem:[%s730_s7 + $0x38] sm:$0xff]  ;;  %v297_v30 = vld [vmem:[%s730_s7 + $0x30] sm:$0xff] }
   0xb   :  { %449 = vmatprep.subr.mxu0 %v515_v0  ;;  %482 = vmatprep.subr.mxu1 %v515_v0  ;;  %v296_v31 = vld [vmem:[%s730_s7 + $0x28] sm:$0xff]  ;;  %v295_v32 = vld [vmem:[%s730_s7 + $0x20] sm:$0xff]  ;;  %v294_v33 = vld [vmem:[%s730_s7 + $0x18] sm:$0xff] }
   0xc   :  { %450 = vmatpush3.msra.mxu0 %v209_v8  ;;  %483 = vmatpush3.msra.mxu1 %v304_v23  ;;  %v392_v36 = vld [vmem:[%s731_s4] ss:$0 sm:$0xff]  ;;  %v293_v42 = vld [vmem:[%s730_s7 + $0x10] sm:$0xff]  ;;  %v292_v43 = vld [vmem:[%s730_s7 + $0x8] sm:$0xff] }
   0xd   :  { %451 = vmatprep.subr.mxu0 %v515_v0  ;;  %484 = vmatprep.subr.mxu1 %v515_v0  ;;  %v291_v44 = vld [vmem:[%s730_s7] sm:$0xff] }
   0xe   :  { %452 = vmatpush3.msra.mxu0 %v208_v9  ;;  %485 = vmatpush3.msra.mxu1 %v303_v24  ;;  %v393_v45 = vld [vmem:[%s732_s6] ss:$0 sm:$0xff] }
   0xf   :  { %453 = vmatprep.subr.mxu0 %v515_v0  ;;  %486 = vmatprep.subr.mxu1 %v515_v0  ;;  %v394_v50 = vld [vmem:[%s733_s8] ss:$0 sm:$0xff] }
  0x10   :  { %454 = vmatpush3.msra.mxu0 %v207_v10  ;;  %487 = vmatpush3.msra.mxu1 %v302_v25 }
  0x11   :  { %455 = vmatprep.subr.mxu0 %v515_v0  ;;  %488 = vmatprep.subr.mxu1 %v515_v0 }
  0x12   :  { %456 = vmatpush3.msra.mxu0 %v206_v11  ;;  %489 = vmatpush3.msra.mxu1 %v301_v26 }
  0x13   :  { %457 = vmatprep.subr.mxu0 %v515_v0  ;;  %490 = vmatprep.subr.mxu1 %v515_v0 }
  0x14   :  { %458 = vmatpush3.msra.mxu0 %v205_v12  ;;  %491 = vmatpush3.msra.mxu1 %v300_v27 }
  0x15   :  { %459 = vmatprep.subr.mxu0 %v515_v0  ;;  %492 = vmatprep.subr.mxu1 %v515_v0 }
  0x16   :  { %460 = vmatpush3.msra.mxu0 %v204_v13  ;;  %493 = vmatpush3.msra.mxu1 %v299_v28 }
  0x17   :  { %461 = vmatprep.subr.mxu0 %v515_v0  ;;  %494 = vmatprep.subr.mxu1 %v515_v0 }
  0x18   :  { %462 = vmatpush3.msra.mxu0 %v203_v14  ;;  %495 = vmatpush3.msra.mxu1 %v298_v29 }
  0x19   :  { %463 = vmatprep.subr.mxu0 %v515_v0  ;;  %496 = vmatprep.subr.mxu1 %v515_v0 }
  0x1a   :  { %464 = vmatpush3.msra.mxu0 %v202_v15  ;;  %497 = vmatpush3.msra.mxu1 %v297_v30 }
  0x1b   :  { %465 = vmatprep.subr.mxu0 %v515_v0  ;;  %498 = vmatprep.subr.mxu1 %v515_v0 }
  0x1c   :  { %466 = vmatpush3.msra.mxu0 %v201_v16  ;;  %499 = vmatpush3.msra.mxu1 %v296_v31 }
  0x1d   :  { %467 = vmatprep.subr.mxu0 %v515_v0  ;;  %500 = vmatprep.subr.mxu1 %v515_v0 }
  0x1e   :  { %468 = vmatpush3.msra.mxu0 %v200_v17  ;;  %501 = vmatpush3.msra.mxu1 %v295_v32 }
  0x1f   :  { %469 = vmatprep.subr.mxu0 %v515_v0  ;;  %502 = vmatprep.subr.mxu1 %v515_v0 }
  0x20   :  { %470 = vmatpush3.msra.mxu0 %v199_v18  ;;  %503 = vmatpush3.msra.mxu1 %v294_v33 }
  0x21   :  { %471 = vmatprep.subr.mxu0 %v515_v0  ;;  %504 = vmatprep.subr.mxu1 %v515_v0 }
  0x22   :  { %472 = vmatpush3.msra.mxu0 %v198_v19  ;;  %505 = vmatpush3.msra.mxu1 %v293_v42 }
  0x23   :  { %473 = vmatprep.subr.mxu0 %v515_v0  ;;  %506 = vmatprep.subr.mxu1 %v515_v0 }
  0x24   :  { %474 = vmatpush3.msra.mxu0 %v197_v20  ;;  %507 = vmatpush3.msra.mxu1 %v292_v43 }
  0x25   :  { %508 = vmatprep.subr.mxu1 %v515_v0 }
  0x26   :  { %509 = vmatpush3.msra.mxu1 %v291_v44 }
  0xc4   :  { %v110_v34 = vpop.f32.mrf.mxu0 }
  0xc5   :  { %v184_v35 = vpop.f32.mrf.mxu1 }
  0xc6   :  { %v185_v37 = vadd.f32 %v184_v35, %v110_v34  ;;  %v437_v38 = vpop.f32.mrf.mxu0 }
  0xc7   :  { %v442_v39 = vpop.f32.mrf.mxu1 }
  0xc8   :  { %v195_v40 = vadd.f32 %v392_v36, %v185_v37 }
  0xca   :  { %v196_v41 = vmax.f32 %v195_v40, 0.0 }
  0xcc   :  { %476 = vmatmul.mubr.f32.vlgmr.msra.gmra.mxu0 %v196_v41 }
 0x18c   :  { %v286_v46 = vpop.f32.mrf.mxu0 }
 0x18d   :  { %v287_v47 = vadd.f32 %v393_v45, %v286_v46 }
 0x18e   :  { %v477_v48 = vpop.f32.mrf.mxu0 }
 0x18f   :  { %v290_v49 = vmax.f32 %v287_v47, 0.0 }
 0x191   :  { %511 = vmatmul.mubr.f32.vlgmr.msra.gmra.mxu1 %v290_v49 }
 0x251   :  { %v380_v51 = vpop.f32.mrf.mxu1 }
 0x252   :  { %v381_v52 = vadd.f32 %v394_v50, %v380_v51 }
 0x253   :  { %v512_v53 = vpop.f32.mrf.mxu1 }
 0x254   :  { %384 = vst [vmem:[%s734_s9] sm:$0xff] %v381_v52 }

</bundles_post_ra>
